<compile_context>
chip_gen: v5e
topology: v5e:2x2
jax: 0.10.0
libtpu: 0.0.40
codegen_flags: <defaults>
</compile_context>

<pallas_src>
import functools

import jax
import jax.numpy as jnp
from jax.experimental import pallas as pl
from jax.experimental.pallas import tpu as pltpu

LEAKY_RATE = 0.1


def _leaky(x):
    # LeakyReLU(0.1): for rate < 1 this is exactly max(x, rate*x) -> one VPU max.
    return jnp.maximum(x, LEAKY_RATE * x)


# ----------------------------------------------------------------------------
# Pallas kernel: single grid step, whole (batch-folded) problem in VMEM.
# ----------------------------------------------------------------------------
def mapping_kernel(p1_ref, g2_ref, dir_ref, w1_ref, w2_ref, w3_ref, out_ref,
                   *, R1, K, D1, D2, C1, C2, C3):
    # Layer-1 packed weights: rows [0:D1] -> grouped_points1 channels,
    # [D1:D1+D2] -> grouped_points2 channels, [D1+D2:D1+D2+3] -> direction_xyz,
    # last row -> bias.  (Same channel order as torch.cat([gp1, gp2, dir]).)
    wp1 = w1_ref[0:D1, :]                           # [D1, C1]
    wp2 = w1_ref[D1:D1 + D2, :]                     # [D2, C1]
    wdir = w1_ref[D1 + D2:D1 + D2 + 3, :]           # [3,  C1]
    b1 = w1_ref[D1 + D2 + 3:D1 + D2 + 4, :]         # [1,  C1]

    # points1 (and the layer-1 bias) are identical across the K neighbors ->
    # compute their contribution to the first 1x1 conv once per center and
    # broadcast over K.
    h_ctr = (jnp.dot(p1_ref[...], wp1,
                     preferred_element_type=jnp.float32) + b1)    # [R1, C1]
    h_nbr = (jnp.dot(g2_ref[...], wp2, preferred_element_type=jnp.float32)
             + jnp.dot(dir_ref[...], wdir,
                       preferred_element_type=jnp.float32))       # [R1*K, C1]

    h = h_nbr.reshape(R1, K, C1) + h_ctr[:, None, :]              # [R1, K, C1]
    h = _leaky(h)                                                 # Conv2d+LeakyReLU

    # Second 1x1 Conv2d (+bias) + LeakyReLU.
    h2 = (jnp.dot(h.reshape(R1 * K, C1), w2_ref[0:C1, :],
                  preferred_element_type=jnp.float32)
          + w2_ref[C1:C1 + 1, :])                                 # [R1*K, C2]
    h2 = _leaky(h2)

    # F.max_pool2d over the K neighbors -> max over the K axis (VPU/XLU reduce).
    pooled = jnp.max(h2.reshape(R1, K, C2), axis=1)               # [R1, C2]

    # mlp2: Conv1d(C2 -> C3, 1, bias=False) + LeakyReLU.
    o = jnp.dot(pooled, w3_ref[...], preferred_element_type=jnp.float32)
    out_ref[...] = _leaky(o)                                      # [R1, C3]


# ----------------------------------------------------------------------------
# JAX glue: kNN grouping, then a single pallas_call over the folded batch.
# ----------------------------------------------------------------------------
# TODO(synk): at production N2/K the kNN gather (topk + index gather) should be
# fused into the kernel via PrefetchScalarGridSpec + manual DMA gather; at the
# toy sizes here it stays in plain JAX.
def _knn_group(xyz1, xyz2, points2, K):
    """xyz1:[B,3,N1] xyz2:[B,3,N2] points2:[B,D2,N2] ->
       direction_xyz [B,N1,K,3], grouped_points2 [B,N1,K,D2]."""
    xyz1_t = jnp.transpose(xyz1, (0, 2, 1))          # [B, N1, 3]
    xyz2_t = jnp.transpose(xyz2, (0, 2, 1))          # [B, N2, 3]
    p2_t = jnp.transpose(points2, (0, 2, 1))         # [B, N2, D2]

    # square_distance(xyz1_t, xyz2_t) -> [B, N1, N2]
    d = -2.0 * jnp.einsum('bnc,bmc->bnm', xyz1_t, xyz2_t)
    d = d + jnp.sum(xyz1_t ** 2, -1)[:, :, None]
    d = d + jnp.sum(xyz2_t ** 2, -1)[:, None, :]

    # torch.topk(..., largest=False, sorted=False): K smallest distances.
    _, knn_idx = jax.lax.top_k(-d, K)                # [B, N1, K]

    gather = jax.vmap(lambda p, i: p[i])             # [N2,C],[N1,K]->[N1,K,C]
    neighbor_xyz = gather(xyz2_t, knn_idx)           # [B, N1, K, 3]
    direction_xyz = neighbor_xyz - xyz1_t[:, :, None, :]
    grouped_p2 = gather(p2_t, knn_idx)               # [B, N1, K, D2]
    return direction_xyz, grouped_p2


def mapping_forward(xyz1, xyz2, points1, points2, params, nsample):
    B, _, N1 = xyz1.shape
    D1 = points1.shape[1]
    D2 = points2.shape[1]
    K = nsample
    C1 = params['w1'].shape[1]
    C2 = params['w2'].shape[1]
    C3 = params['w3'].shape[1]

    direction_xyz, grouped_p2 = _knn_group(xyz1, xyz2, points2, K)

    R1 = B * N1
    RK = R1 * K
    p1_flat = jnp.transpose(points1, (0, 2, 1)).reshape(R1, D1)  # [B*N1, D1]
    g2_flat = grouped_p2.reshape(RK, D2)                         # [B*N1*K, D2]
    dir_flat = direction_xyz.reshape(RK, 3)                      # [B*N1*K, 3]

    kernel = functools.partial(mapping_kernel, R1=R1, K=K, D1=D1, D2=D2,
                               C1=C1, C2=C2, C3=C3)
    out = pl.pallas_call(
        kernel,
        out_shape=jax.ShapeDtypeStruct((R1, C3), jnp.float32),
        grid=(1,),
        in_specs=[
            pl.BlockSpec((R1, D1),            lambda i: (0, 0)),
            pl.BlockSpec((RK, D2),            lambda i: (0, 0)),
            pl.BlockSpec((RK, 3),             lambda i: (0, 0)),
            pl.BlockSpec((D1 + D2 + 4, C1),   lambda i: (0, 0)),
            pl.BlockSpec((C1 + 1, C2),        lambda i: (0, 0)),
            pl.BlockSpec((C2, C3),            lambda i: (0, 0)),
        ],
        out_specs=pl.BlockSpec((R1, C3), lambda i: (0, 0)),
        compiler_params=pltpu.CompilerParams(
            dimension_semantics=("arbitrary",)),
    )(p1_flat, g2_flat, dir_flat, params['w1'], params['w2'], params['w3'])

    new_points = jnp.transpose(out.reshape(B, N1, C3), (0, 2, 1))  # [B, C3, N1]
    return new_points


# ----------------------------------------------------------------------------
# Pure-JAX reference (mirrors the PyTorch forward op-by-op) for verification.
# ----------------------------------------------------------------------------
def mapping_reference(xyz1, xyz2, points1, points2, params, nsample):
    B, _, N1 = xyz1.shape
    D1 = points1.shape[1]
    D2 = points2.shape[1]
    K = nsample
    Cin = D1 + D2 + 3
    C1 = params['w1'].shape[1]

    direction_xyz, grouped_p2 = _knn_group(xyz1, xyz2, points2, K)
    p1_t = jnp.transpose(points1, (0, 2, 1))                       # [B, N1, D1]
    grouped_p1 = jnp.broadcast_to(p1_t[:, :, None, :], (B, N1, K, D1))
    new_points = jnp.concatenate([grouped_p1, grouped_p2, direction_xyz],
                                 axis=-1)                          # [B,N1,K,Cin]

    def leaky(x):
        return jnp.where(x > 0, x, LEAKY_RATE * x)

    w1, w2, w3 = params['w1'], params['w2'], params['w3']
    h = leaky(jnp.einsum('bnkc,cd->bnkd', new_points, w1[:Cin]) + w1[Cin])
    h = leaky(jnp.einsum('bnkc,cd->bnkd', h, w2[:C1]) + w2[C1])
    pooled = jnp.max(h, axis=2)                                    # [B, N1, C2]
    o = leaky(jnp.einsum('bnc,cd->bnd', pooled, w3))               # [B, N1, C3]
    return jnp.transpose(o, (0, 2, 1))                             # [B, C3, N1]


# ----------------------------------------------------------------------------
if __name__ == "__main__":
    B, N1, N2 = 2, 8, 16        # batch, joints, local points
    D1, D2 = 4, 4               # in_channel, latent_channel
    K = 8                       # nsample
    C1, C2, C3 = 16, 16, 16     # mlp=[16,16], mlp2=[16]
    Cin = D1 + D2 + 3

    key = jax.random.PRNGKey(0)
    ks = jax.random.split(key, 7)
    xyz1 = jax.random.normal(ks[0], (B, 3, N1), jnp.float32)
    xyz2 = jax.random.normal(ks[1], (B, 3, N2), jnp.float32)
    points1 = jax.random.normal(ks[2], (B, D1, N1), jnp.float32)
    points2 = jax.random.normal(ks[3], (B, D2, N2), jnp.float32)

    # Packed parameters (shapes per __init__; channel order [D1 | D2 | 3]):
    #   mlp_convs[0]: Conv2d(Cin, 16, 1) + bias   -> w1 [Cin+1, 16] (last row = b)
    #   mlp_convs[1]: Conv2d(16, 16, 1) + bias    -> w2 [17, 16]    (last row = b)
    #   mlp2_convs[0]: Conv1d(16, 16, 1, bias=F)  -> w3 [16, 16]
    params = dict(
        w1=0.2 * jax.random.normal(ks[4], (Cin + 1, C1), jnp.float32),
        w2=0.2 * jax.random.normal(ks[5], (C1 + 1, C2), jnp.float32),
        w3=0.2 * jax.random.normal(ks[6], (C2, C3), jnp.float32),
    )

    fwd = jax.jit(functools.partial(mapping_forward, nsample=K))
    new_points = fwd(xyz1, xyz2, points1, points2, params)
    jax.block_until_ready(new_points)

    ref_points = mapping_reference(xyz1, xyz2, points1, points2, params, K)
    assert new_points.shape == (B, C3, N1)
    assert jnp.allclose(new_points, ref_points, atol=1e-4, rtol=1e-4)

    print("KERNEL_OK")
</pallas_src>

<mosaic_0001>
module attributes {stable_mosaic.version = 11 : i64} {
  func.func @mapping_kernel(%arg0: i32, %arg1: memref<16x4xf32, #tpu.memory_space<vmem>>, %arg2: memref<128x4xf32, #tpu.memory_space<vmem>>, %arg3: memref<128x3xf32, #tpu.memory_space<vmem>>, %arg4: memref<12x16xf32, #tpu.memory_space<vmem>>, %arg5: memref<17x16xf32, #tpu.memory_space<vmem>>, %arg6: memref<16x16xf32, #tpu.memory_space<vmem>>, %arg7: memref<16x16xf32, #tpu.memory_space<vmem>>) attributes {dimension_semantics = [#tpu.dimension_semantics<arbitrary>], iteration_bounds = array<i64: 1>, scalar_prefetch = 0 : i64, scratch_operands = 0 : i64, tpu.core_type = #tpu.core_type<tc>, window_params = [{pipeline_mode = #tpu.pipeline_mode<synchronous>, transform_indices = @transform_0, window_bounds = array<i64: 16, 4>}, {pipeline_mode = #tpu.pipeline_mode<synchronous>, transform_indices = @transform_1, window_bounds = array<i64: 128, 4>}, {pipeline_mode = #tpu.pipeline_mode<synchronous>, transform_indices = @transform_2, window_bounds = array<i64: 128, 3>}, {pipeline_mode = #tpu.pipeline_mode<synchronous>, transform_indices = @transform_3, window_bounds = array<i64: 12, 16>}, {pipeline_mode = #tpu.pipeline_mode<synchronous>, transform_indices = @transform_4, window_bounds = array<i64: 17, 16>}, {pipeline_mode = #tpu.pipeline_mode<synchronous>, transform_indices = @transform_5, window_bounds = array<i64: 16, 16>}, {pipeline_mode = #tpu.pipeline_mode<synchronous>, transform_indices = @transform_6, window_bounds = array<i64: 16, 16>}]} {
    %c0 = arith.constant 0 : index
    %c0_0 = arith.constant 0 : index
    %0 = vector.load %arg4[%c0, %c0_0] : memref<12x16xf32, #tpu.memory_space<vmem>>, vector<4x16xf32>
    %c4 = arith.constant 4 : index
    %c0_1 = arith.constant 0 : index
    %1 = vector.load %arg4[%c4, %c0_1] : memref<12x16xf32, #tpu.memory_space<vmem>>, vector<4x16xf32>
    %c8 = arith.constant 8 : index
    %c0_2 = arith.constant 0 : index
    %2 = vector.load %arg4[%c8, %c0_2] : memref<12x16xf32, #tpu.memory_space<vmem>>, vector<3x16xf32>
    %c11 = arith.constant 11 : index
    %c0_3 = arith.constant 0 : index
    %3 = vector.load %arg4[%c11, %c0_3] : memref<12x16xf32, #tpu.memory_space<vmem>>, vector<1x16xf32>
    %c0_4 = arith.constant 0 : index
    %c0_5 = arith.constant 0 : index
    %4 = vector.load %arg1[%c0_4, %c0_5] : memref<16x4xf32, #tpu.memory_space<vmem>>, vector<16x4xf32>
    %cst = arith.constant dense<0.000000e+00> : vector<16x16xf32>
    %5 = tpu.matmul %4, %0, %cst {dimension_numbers = #tpu.dot_dimension_numbers<[1], [0], [0], [1], [0, 0, 1, 1], [], []>} : vector<16x4xf32>, vector<4x16xf32>, vector<16x16xf32> -> vector<16x16xf32>
    %6 = vector.broadcast %3 : vector<1x16xf32> to vector<16x16xf32>
    %7 = arith.addf %5, %6 : vector<16x16xf32>
    %c0_6 = arith.constant 0 : index
    %c0_7 = arith.constant 0 : index
    %8 = vector.load %arg2[%c0_6, %c0_7] : memref<128x4xf32, #tpu.memory_space<vmem>>, vector<128x4xf32>
    %cst_8 = arith.constant dense<0.000000e+00> : vector<128x16xf32>
    %9 = tpu.matmul %8, %1, %cst_8 {dimension_numbers = #tpu.dot_dimension_numbers<[1], [0], [0], [1], [0, 0, 1, 1], [], []>} : vector<128x4xf32>, vector<4x16xf32>, vector<128x16xf32> -> vector<128x16xf32>
    %c0_9 = arith.constant 0 : index
    %c0_10 = arith.constant 0 : index
    %10 = vector.load %arg3[%c0_9, %c0_10] : memref<128x3xf32, #tpu.memory_space<vmem>>, vector<128x3xf32>
    %cst_11 = arith.constant dense<0.000000e+00> : vector<128x16xf32>
    %11 = tpu.matmul %10, %2, %cst_11 {dimension_numbers = #tpu.dot_dimension_numbers<[1], [0], [0], [1], [0, 0, 1, 1], [], []>} : vector<128x3xf32>, vector<3x16xf32>, vector<128x16xf32> -> vector<128x16xf32>
    %12 = arith.addf %9, %11 : vector<128x16xf32>
    %13 = vector.shape_cast %12 : vector<128x16xf32> to vector<16x8x16xf32>
    %14 = vector.shape_cast %7 : vector<16x16xf32> to vector<16x1x16xf32>
    %15 = vector.broadcast %14 : vector<16x1x16xf32> to vector<16x8x16xf32>
    %16 = arith.addf %13, %15 : vector<16x8x16xf32>
    %cst_12 = arith.constant 1.000000e-01 : f32
    %17 = vector.broadcast %cst_12 : f32 to vector<16x8x16xf32>
    %18 = arith.mulf %17, %16 : vector<16x8x16xf32>
    %19 = arith.maximumf %16, %18 : vector<16x8x16xf32>
    %20 = vector.shape_cast %19 : vector<16x8x16xf32> to vector<128x16xf32>
    %c0_13 = arith.constant 0 : index
    %c0_14 = arith.constant 0 : index
    %21 = vector.load %arg5[%c0_13, %c0_14] : memref<17x16xf32, #tpu.memory_space<vmem>>, vector<16x16xf32>
    %cst_15 = arith.constant dense<0.000000e+00> : vector<128x16xf32>
    %22 = tpu.matmul %20, %21, %cst_15 {dimension_numbers = #tpu.dot_dimension_numbers<[1], [0], [0], [1], [0, 0, 1, 1], [], []>} : vector<128x16xf32>, vector<16x16xf32>, vector<128x16xf32> -> vector<128x16xf32>
    %c16 = arith.constant 16 : index
    %c0_16 = arith.constant 0 : index
    %23 = vector.load %arg5[%c16, %c0_16] : memref<17x16xf32, #tpu.memory_space<vmem>>, vector<1x16xf32>
    %24 = vector.broadcast %23 : vector<1x16xf32> to vector<128x16xf32>
    %25 = arith.addf %22, %24 : vector<128x16xf32>
    %cst_17 = arith.constant 1.000000e-01 : f32
    %26 = vector.broadcast %cst_17 : f32 to vector<128x16xf32>
    %27 = arith.mulf %26, %25 : vector<128x16xf32>
    %28 = arith.maximumf %25, %27 : vector<128x16xf32>
    %29 = vector.shape_cast %28 : vector<128x16xf32> to vector<16x8x16xf32>
    %cst_18 = arith.constant dense<0xFF800000> : vector<16x16xf32>
    %30 = vector.multi_reduction <maximumf>, %29, %cst_18 [1] : vector<16x8x16xf32> to vector<16x16xf32>
    %c0_19 = arith.constant 0 : index
    %c0_20 = arith.constant 0 : index
    %31 = vector.load %arg6[%c0_19, %c0_20] : memref<16x16xf32, #tpu.memory_space<vmem>>, vector<16x16xf32>
    %cst_21 = arith.constant dense<0.000000e+00> : vector<16x16xf32>
    %32 = tpu.matmul %30, %31, %cst_21 {dimension_numbers = #tpu.dot_dimension_numbers<[1], [0], [0], [1], [0, 0, 1, 1], [], []>} : vector<16x16xf32>, vector<16x16xf32>, vector<16x16xf32> -> vector<16x16xf32>
    %cst_22 = arith.constant 1.000000e-01 : f32
    %33 = vector.broadcast %cst_22 : f32 to vector<16x16xf32>
    %34 = arith.mulf %33, %32 : vector<16x16xf32>
    %35 = arith.maximumf %32, %34 : vector<16x16xf32>
    %c0_23 = arith.constant 0 : index
    %c0_24 = arith.constant 0 : index
    %36 = vector.load %arg7[%c0_23, %c0_24] : memref<16x16xf32, #tpu.memory_space<vmem>>, vector<16x16xf32>
    tpu.vector_store %arg7[%c0_23, %c0_24], %35 {strides = array<i32>} : memref<16x16xf32, #tpu.memory_space<vmem>>, vector<16x16xf32>,
    return
  }
  func.func @transform_0(%arg0: i32) -> (i32, i32) {
    %c0_i32 = arith.constant 0 : i32
    %c0_i32_0 = arith.constant 0 : i32
    %c0_i32_1 = arith.constant 0 : i32
    return %c0_i32, %c0_i32_0 : i32, i32
  }
  func.func @transform_1(%arg0: i32) -> (i32, i32) {
    %c0_i32 = arith.constant 0 : i32
    %c0_i32_0 = arith.constant 0 : i32
    %c0_i32_1 = arith.constant 0 : i32
    return %c0_i32, %c0_i32_0 : i32, i32
  }
  func.func @transform_2(%arg0: i32) -> (i32, i32) {
    %c0_i32 = arith.constant 0 : i32
    %c0_i32_0 = arith.constant 0 : i32
    %c0_i32_1 = arith.constant 0 : i32
    return %c0_i32, %c0_i32_0 : i32, i32
  }
  func.func @transform_3(%arg0: i32) -> (i32, i32) {
    %c0_i32 = arith.constant 0 : i32
    %c0_i32_0 = arith.constant 0 : i32
    %c0_i32_1 = arith.constant 0 : i32
    return %c0_i32, %c0_i32_0 : i32, i32
  }
  func.func @transform_4(%arg0: i32) -> (i32, i32) {
    %c0_i32 = arith.constant 0 : i32
    %c0_i32_0 = arith.constant 0 : i32
    %c0_i32_1 = arith.constant 0 : i32
    return %c0_i32, %c0_i32_0 : i32, i32
  }
  func.func @transform_5(%arg0: i32) -> (i32, i32) {
    %c0_i32 = arith.constant 0 : i32
    %c0_i32_0 = arith.constant 0 : i32
    %c0_i32_1 = arith.constant 0 : i32
    return %c0_i32, %c0_i32_0 : i32, i32
  }
  func.func @transform_6(%arg0: i32) -> (i32, i32) {
    %c0_i32 = arith.constant 0 : i32
    %c0_i32_0 = arith.constant 0 : i32
    %c0_i32_1 = arith.constant 0 : i32
    return %c0_i32, %c0_i32_0 : i32, i32
  }
}

</mosaic_0001>

<bundles_post_ra>
// kernel: mapping_forward.1
= control target key start
LH: loop header
LB: loop body
LE: loop exit
PB: predicated region body
PF: predicated region fallthrough
CT: control target
= control target key end

     0   :  { %vm38_vm0 = vcmask 1043456   ;;  %vm31_vm1 = vcmask 31744   ;;  %vm146_vm2 = vcmask 1042432   ;;  %vm97_vm3 = vcmask 23552   ;;  %s1167_s0 = inlined_call_operand.vmem [shape: f32[16,4], index: 0, kind: input, shape index: {}]   ;;  %s1168_s1 = inlined_call_operand.vmem [shape: f32[128,4], index: 1, kind: input, shape index: {}]   ;;  %s1169_s2 = inlined_call_operand.vmem [shape: f32[128,3], index: 2, kind: input, shape index: {}]   ;;  %s1170_s3 = inlined_call_operand.vmem [shape: f32[12,16], index: 3, kind: input, shape index: {}]   ;;  %s1171_s4 = inlined_call_operand.vmem [shape: f32[17,16], index: 4, kind: input, shape index: {}]   ;;  %s1172_s5 = inlined_call_operand.vmem [shape: f32[16,16], index: 5, kind: input, shape index: {}]   ;;  %s1173_s6 = inlined_call_operand.hbm [shape: f32[16,16], index: 6, kind: output, shape index: {}]  }
   0x1   :  { %v24_v0 = vld [vmem:[%s1170_s3] sm:$0xf]  ;;  %v25_v1 = vld [vmem:[%s1170_s3 + $0x4] sm:$0xf]  ;;  %v68_v3 = vld [vmem:[%s1168_s1 + $0x18] sm:$0xff] }
   0x2   :  { %v28_v2 = vld [vmem:[%s1167_s0] sm:$0xff]  ;;  %779 = vmatpush.msk.msra.mxu0 %vm38_vm0, %v24_v0  ;;  %835 = vmatpush.msk.msra.mxu2 %vm38_vm0, %v25_v1  ;;  %v26_v4 = vld [vmem:[%s1170_s3 + $0x8] sm:$0x7]  ;;  %v84_v5 = vld [vmem:[%s1169_s2 + $0x18] sm:$0xff] }
   0x3   :  { %780 = vmatmul.msk.f32.vlgmr.msra.gmra.mxu0 %vm31_vm1, %v28_v2  ;;  %803 = vmatmul.msk.f32.vlgmr.msra.gmra.mxu2 %vm31_vm1, %v68_v3  ;;  %v29_v6 = vld [vmem:[%s1167_s0 + $0x8] sm:$0xff]  ;;  %v69_v7 = vld [vmem:[%s1168_s1 + $0x20] sm:$0xff] }
   0x4   :  { %834 = vmatpush.msk.msra.mxu1 %vm146_vm2, %v26_v4  ;;  %782 = vmatpush.msk.msrb.mxu0 %vm146_vm2, %v26_v4 }
   0x5   :  { %786 = vmatmul.msk.f32.vlgmr.msra.gmra.mxu1 %vm97_vm3, %v84_v5 }
   0x6   :  { %799 = vmatpush.msk.msra.mxu0 %vm38_vm0, %v25_v1 }
   0x7   :  { %11 = vsyncpa [#allocation3], 0  ;;  %v85_v8 = vld [vmem:[%s1169_s2 + $0x20] sm:$0xff]  ;;  %v70_v10 = vld [vmem:[%s1168_s1 + $0x28] sm:$0xff]  ;;  %vm431_vm4 = vcmask 130048   ;;  %vm707_vm5 = vcmask 1041409  }
   0x8   :  { %v81_v9 = vld [vmem:[%s1169_s2] sm:$0xff]  ;;  %v86_v11 = vld [vmem:[%s1169_s2 + $0x28] sm:$0xff]  ;;  %v71_v13 = vld [vmem:[%s1168_s1 + $0x30] sm:$0xff]  ;;  %vm709_vm6 = vcmask 1042434   ;;  %vm711_vm7 = vcmask 1043459   ;;  %vm713_vm8 = vcmask 1044484  }
   0x9   :  { %v82_v12 = vld [vmem:[%s1169_s2 + $0x8] sm:$0xff]  ;;  %v87_v14 = vld [vmem:[%s1169_s2 + $0x30] sm:$0xff]  ;;  %v72_v16 = vld [vmem:[%s1168_s1 + $0x38] sm:$0xff]  ;;  %vm715_vm9 = vcmask 1045509   ;;  %vm717_vm10 = vcmask 1046534   ;;  %vm719_vm11 = vcmask 1047559  }
   0xa   :  { %v83_v15 = vld [vmem:[%s1169_s2 + $0x10] sm:$0xff]  ;;  %v88_v17 = vld [vmem:[%s1169_s2 + $0x38] sm:$0xff]  ;;  %v65_v18 = vld [vmem:[%s1168_s1] sm:$0xff]  ;;  %s767_s7 = sshll.u32 %s1173_s6, 4  ;;  %s870_s8 = smov 128   ;;  %s768_s7 = int_to_ptr.hbm [resolvable:$true] %s767_s7 }
   0xb   :  { %781 = vmatmul.msk.f32.gmra.mxu0 %vm31_vm1, %v29_v6  ;;  %804 = vmatmul.msk.f32.gmra.mxu2 %vm31_vm1, %v69_v7  ;;  %v73_v19 = vld [vmem:[%s1168_s1 + $0x40] sm:$0xff]  ;;  %v66_v21 = vld [vmem:[%s1168_s1 + $0x8] sm:$0xff]  ;;  %v67_v24 = vld [vmem:[%s1168_s1 + $0x10] sm:$0xff]  ;;  %s871_s9 = smov 8  }
   0xc   :  { %v89_v20 = vld [vmem:[%s1169_s2 + $0x40] sm:$0xff]  ;;  %v74_v22 = vld [vmem:[%s1168_s1 + $0x48] sm:$0xff]  ;;  %v75_v25 = vld [vmem:[%s1168_s1 + $0x50] sm:$0xff] }
   0xd   :  { %787 = vmatmul.msk.f32.gmra.mxu1 %vm97_vm3, %v85_v8  ;;  %v90_v23 = vld [vmem:[%s1169_s2 + $0x48] sm:$0xff]  ;;  %v91_v26 = vld [vmem:[%s1169_s2 + $0x50] sm:$0xff]  ;;  %v76_v27 = vld [vmem:[%s1168_s1 + $0x58] sm:$0xff] }
   0xe   :  { %v92_v28 = vld [vmem:[%s1169_s2 + $0x58] sm:$0xff]  ;;  %v77_v29 = vld [vmem:[%s1168_s1 + $0x60] sm:$0xff]  ;;  %v78_v31 = vld [vmem:[%s1168_s1 + $0x68] sm:$0xff] }
   0xf   :  { %v93_v30 = vld [vmem:[%s1169_s2 + $0x60] sm:$0xff]  ;;  %v94_v32 = vld [vmem:[%s1169_s2 + $0x68] sm:$0xff]  ;;  %v79_v33 = vld [vmem:[%s1168_s1 + $0x70] sm:$0xff] }
  0x10   :  { %v95_v34 = vld [vmem:[%s1169_s2 + $0x70] sm:$0xff]  ;;  %v80_v35 = vld [vmem:[%s1168_s1 + $0x78] sm:$0xff]  ;;  %v428_v37 = vld [vmem:[%s1171_s4 + $0x8] sm:$0xff] }
  0x11   :  { %v96_v36 = vld [vmem:[%s1169_s2 + $0x78] sm:$0xff]  ;;  %836 = vmatpush.msra.mxu3 %v428_v37  ;;  %v427_v38 = vld [vmem:[%s1171_s4] sm:$0xff]  ;;  %v841_v39 = vld [vmem:[%s1170_s3 + $0xb] ss:$0 sm:$0xff] }
  0x13   :  { %783 = vmatmul.msk.f32.vlgmr.msrb.gmra.mxu0 %vm97_vm3, %v81_v9  ;;  %805 = vmatmul.msk.f32.gmra.mxu2 %vm31_vm1, %v70_v10 }
  0x14   :  { %494 = vmatpush.msrb.mxu0 %v428_v37  ;;  %837 = vmatpush.msra.mxu3 %v427_v38 }
  0x15   :  { %788 = vmatmul.msk.f32.gmra.mxu1 %vm97_vm3, %v86_v11 }
  0x16   :  { %495 = vmatpush.msrb.mxu0 %v427_v38 }
  0x1b   :  { %784 = vmatmul.msk.f32.gmra.mxu0 %vm97_vm3, %v82_v12  ;;  %806 = vmatmul.msk.f32.gmra.mxu2 %vm31_vm1, %v71_v13 }
  0x1d   :  { %789 = vmatmul.msk.f32.gmra.mxu1 %vm97_vm3, %v87_v14 }
  0x23   :  { %785 = vmatmul.msk.f32.gmra.mxu0 %vm97_vm3, %v83_v15  ;;  %807 = vmatmul.msk.f32.gmra.mxu2 %vm31_vm1, %v72_v16 }
  0x25   :  { %790 = vmatmul.msk.f32.gmra.mxu1 %vm97_vm3, %v88_v17 }
  0x2b   :  { %800 = vmatmul.msk.f32.vlgmr.msra.gmra.mxu0 %vm31_vm1, %v65_v18  ;;  %808 = vmatmul.msk.f32.gmra.mxu2 %vm31_vm1, %v73_v19 }
  0x2d   :  { %791 = vmatmul.msk.f32.gmra.mxu1 %vm97_vm3, %v89_v20 }
  0x33   :  { %801 = vmatmul.msk.f32.gmra.mxu0 %vm31_vm1, %v66_v21  ;;  %809 = vmatmul.msk.f32.gmra.mxu2 %vm31_vm1, %v74_v22 }
  0x35   :  { %792 = vmatmul.msk.f32.gmra.mxu1 %vm97_vm3, %v90_v23 }
  0x3b   :  { %802 = vmatmul.msk.f32.gmra.mxu0 %vm31_vm1, %v67_v24  ;;  %810 = vmatmul.msk.f32.gmra.mxu2 %vm31_vm1, %v75_v25 }
  0x3d   :  { %793 = vmatmul.msk.f32.gmra.mxu1 %vm97_vm3, %v91_v26 }
  0x43   :  { %811 = vmatmul.msk.f32.gmra.mxu2 %vm31_vm1, %v76_v27 }
  0x45   :  { %794 = vmatmul.msk.f32.gmra.mxu1 %vm97_vm3, %v92_v28 }
  0x4b   :  { %812 = vmatmul.msk.f32.gmra.mxu2 %vm31_vm1, %v77_v29 }
  0x4d   :  { %795 = vmatmul.msk.f32.gmra.mxu1 %vm97_vm3, %v93_v30 }
  0x53   :  { %813 = vmatmul.msk.f32.gmra.mxu2 %vm31_vm1, %v78_v31 }
  0x55   :  { %796 = vmatmul.msk.f32.gmra.mxu1 %vm97_vm3, %v94_v32 }
  0x5b   :  { %814 = vmatmul.msk.f32.gmra.mxu2 %vm31_vm1, %v79_v33 }
  0x5d   :  { %797 = vmatmul.msk.f32.gmra.mxu1 %vm97_vm3, %v95_v34 }
  0x63   :  { %815 = vmatmul.msk.f32.gmra.mxu2 %vm31_vm1, %v80_v35 }
  0x65   :  { %798 = vmatmul.msk.f32.gmra.mxu1 %vm97_vm3, %v96_v36 }
  0x80   :  { %v59_v40 = vpop.f32.mrf.mxu0 }
  0x81   :  { %v1064_v41 = vadd.f32 %v841_v39, %v59_v40 }
  0x82   :  { %v176_v42 = vpop.f32.mrf.mxu1 }
  0x83   :  { %v335_v43 = vrot.slane %v1064_v41, 3  ;;  %v336_v51 = vrot.slane %v1064_v41, 4  ;;  %v337_v60 = vrot.slane %v1064_v41, 5  ;;  %v338_v5 = vrot.slane %v1064_v41, 6 }
  0x84   :  { %v339_v14 = vrot.slane %v1064_v41, 7  ;;  %v347_v23 = vperm.slane %v1064_v41, 0  ;;  %v333_v30 = vrot.slane %v1064_v41, 1 }
  0x85   :  { %v350_v44 = vperm.slane %v335_v43, 0  ;;  %v351_v55 = vperm.slane %v336_v51, 0  ;;  %v352_v0 = vperm.slane %v337_v60, 0  ;;  %v353_v9 = vperm.slane %v338_v5, 0 }
  0x86   :  { %v292_v45 = vpop.f32.mrf.mxu2  ;;  %v354_v18 = vperm.slane %v339_v14, 0  ;;  %v348_v37 = vperm.slane %v333_v30, 0 }
  0x87   :  { %v293_v46 = vadd.f32 %v292_v45, %v176_v42  ;;  %v334_v45 = vrot.slane %v1064_v41, 2 }
  0x88   :  { %v62_v47 = vpop.f32.mrf.mxu0 }
  0x89   :  { %v382_v48 = vadd.f32 %v350_v44, %v293_v46  ;;  %v1075_v20 = vadd.f32 %v841_v39, %v62_v47 }
  0x8a   :  { %v179_v49 = vpop.f32.mrf.mxu1 }
  0x8b   :  { %v398_v50 = vmul.f32 0.1, %v382_v48  ;;  %v355_v28 = vperm.slane %v1075_v20, 0  ;;  %v340_v42 = vrot.slane %v1075_v20, 1 }
  0x8d   :  { %v414_v52 = vmax.f32 %v382_v48, %v398_v50  ;;  %v356_v48 = vperm.slane %v340_v42, 0 }
  0x8e   :  { %v295_v53 = vpop.f32.mrf.mxu2 }
  0x8f   :  { %v296_v54 = vadd.f32 %v295_v53, %v179_v49  ;;  %819 = vmatmul.msk.f32.vlgmr.msra.gmra.mxu3 %vm431_vm4, %v414_v52  ;;  %v349_v53 = vperm.slane %v334_v45, 0 }
  0x90   :  { %v167_v56 = vpop.f32.mrf.mxu0 }
  0x91   :  { %v383_v57 = vadd.f32 %v351_v55, %v296_v54 }
  0x92   :  { %v182_v58 = vpop.f32.mrf.mxu1 }
  0x93   :  { %v399_v59 = vmul.f32 0.1, %v383_v57 }
  0x95   :  { %v415_v61 = vmax.f32 %v383_v57, %v399_v59  ;;  %v341_v57 = vrot.slane %v1075_v20, 2 }
  0x96   :  { %v298_v62 = vpop.f32.mrf.mxu2 }
  0x97   :  { %v299_v63 = vadd.f32 %v298_v62, %v182_v58  ;;  %820 = vmatmul.msk.f32.gmra.mxu3 %vm431_vm4, %v415_v61  ;;  %v357_v61 = vperm.slane %v341_v57, 0 }
  0x98   :  { %v170_v1 = vpop.f32.mrf.mxu0 }
  0x99   :  { %v384_v2 = vadd.f32 %v352_v0, %v299_v63 }
  0x9a   :  { %v185_v3 = vpop.f32.mrf.mxu1 }
  0x9b   :  { %v400_v4 = vmul.f32 0.1, %v384_v2 }
  0x9d   :  { %v416_v6 = vmax.f32 %v384_v2, %v400_v4  ;;  %v342_v2 = vrot.slane %v1075_v20, 3 }
  0x9e   :  { %v301_v7 = vpop.f32.mrf.mxu2 }
  0x9f   :  { %v302_v8 = vadd.f32 %v301_v7, %v185_v3  ;;  %821 = vmatmul.msk.f32.gmra.mxu3 %vm431_vm4, %v416_v6  ;;  %v358_v6 = vperm.slane %v342_v2, 0 }
  0xa0   :  { %v173_v10 = vpop.f32.mrf.mxu0 }
  0xa1   :  { %v385_v11 = vadd.f32 %v353_v9, %v302_v8 }
  0xa2   :  { %v188_v12 = vpop.f32.mrf.mxu1 }
  0xa3   :  { %v401_v13 = vmul.f32 0.1, %v385_v11 }
  0xa5   :  { %v417_v15 = vmax.f32 %v385_v11, %v401_v13 }
  0xa6   :  { %v304_v16 = vpop.f32.mrf.mxu2 }
  0xa7   :  { %v305_v17 = vadd.f32 %v304_v16, %v188_v12  ;;  %822 = vmatmul.msk.f32.gmra.mxu3 %vm431_vm4, %v417_v15 }
  0xa8   :  { %v283_v19 = vpop.f32.mrf.mxu0 }
  0xa9   :  { %v386_v21 = vadd.f32 %v354_v18, %v305_v17  ;;  %v284_v22 = vadd.f32 %v283_v19, %v167_v56  ;;  %v344_v18 = vrot.slane %v1075_v20, 5 }
  0xaa   :  { %v191_v24 = vpop.f32.mrf.mxu1 }
  0xab   :  { %v402_v25 = vmul.f32 0.1, %v386_v21  ;;  %v379_v26 = vadd.f32 %v347_v23, %v284_v22  ;;  %v360_v23 = vperm.slane %v344_v18, 0 }
  0xad   :  { %v395_v27 = vmul.f32 0.1, %v379_v26  ;;  %v418_v29 = vmax.f32 %v386_v21, %v402_v25 }
  0xae   :  { %v307_v31 = vpop.f32.mrf.mxu2 }
  0xaf   :  { %v411_v32 = vmax.f32 %v379_v26, %v395_v27  ;;  %v308_v33 = vadd.f32 %v307_v31, %v191_v24  ;;  %823 = vmatmul.msk.f32.gmra.mxu3 %vm431_vm4, %v418_v29  ;;  %v345_v27 = vrot.slane %v1075_v20, 6 }
  0xb0   :  { %v286_v34 = vpop.f32.mrf.mxu0 }
  0xb1   :  { %v387_v35 = vadd.f32 %v355_v28, %v308_v33  ;;  %v287_v36 = vadd.f32 %v286_v34, %v170_v1  ;;  %816 = vmatmul.msk.f32.vlgmr.msrb.gmra.mxu0 %vm431_vm4, %v411_v32  ;;  %v361_v31 = vperm.slane %v345_v27, 0  ;;  %v346_v34 = vrot.slane %v1075_v20, 7 }
  0xb2   :  { %v194_v38 = vpop.f32.mrf.mxu1 }
  0xb3   :  { %v403_v39 = vmul.f32 0.1, %v387_v35  ;;  %v380_v40 = vadd.f32 %v348_v37, %v287_v36 }
  0xb5   :  { %v396_v43 = vmul.f32 0.1, %v380_v40  ;;  %v419_v44 = vmax.f32 %v387_v35, %v403_v39  ;;  %v362_v39 = vperm.slane %v346_v34, 0 }
  0xb6   :  { %v310_v46 = vpop.f32.mrf.mxu2 }
  0xb7   :  { %v311_v47 = vadd.f32 %v310_v46, %v194_v38  ;;  %824 = vmatmul.msk.f32.gmra.mxu3 %vm431_vm4, %v419_v44  ;;  %v412_v49 = vmax.f32 %v380_v40, %v396_v43 }
  0xb8   :  { %v289_v50 = vpop.f32.mrf.mxu0 }
  0xb9   :  { %v388_v51 = vadd.f32 %v356_v48, %v311_v47  ;;  %v290_v52 = vadd.f32 %v289_v50, %v173_v10  ;;  %817 = vmatmul.msk.f32.gmra.mxu0 %vm431_vm4, %v412_v49  ;;  %v343_v10 = vrot.slane %v1075_v20, 4  ;;  %v1103_v47 = vld [vmem:[%s1171_s4 + $0x10] ss:$0 sm:$0xff] }
  0xba   :  { %v197_v54 = vpop.f32.mrf.mxu1 }
  0xbb   :  { %v404_v55 = vmul.f32 0.1, %v388_v51  ;;  %v381_v56 = vadd.f32 %v349_v53, %v290_v52  ;;  %v359_v14 = vperm.slane %v343_v10, 0 }
  0xbd   :  { %v397_v58 = vmul.f32 0.1, %v381_v56  ;;  %v420_v59 = vmax.f32 %v388_v51, %v404_v55 }
  0xbe   :  { %v313_v41 = vpop.f32.mrf.mxu2 }
  0xbf   :  { %v314_v60 = vadd.f32 %v313_v41, %v197_v54  ;;  %825 = vmatmul.msk.f32.gmra.mxu3 %vm431_vm4, %v420_v59  ;;  %v413_v62 = vmax.f32 %v381_v56, %v397_v58 }
  0xc1   :  { %v389_v63 = vadd.f32 %v357_v61, %v314_v60  ;;  %818 = vmatmul.msk.f32.gmra.mxu0 %vm431_vm4, %v413_v62  ;;  %v690_v60 = vld [vmem:[%s1172_s5 + $0x8] sm:$0xff] }
  0xc2   :  { %v200_v0 = vpop.f32.mrf.mxu1  ;;  %746 = vmatpush.msra.mxu0 %v690_v60 }
  0xc3   :  { %v405_v1 = vmul.f32 0.1, %v389_v63 }
  0xc5   :  { %v421_v3 = vmax.f32 %v389_v63, %v405_v1  ;;  %v689_v1 = vld [vmem:[%s1172_s5] sm:$0xff]  ;;  %s869_s5 = smov [#allocation2]  }
  0xc6   :  { %v316_v4 = vpop.f32.mrf.mxu2  ;;  %747 = vmatpush.msra.mxu0 %v689_v1  ;;  %s765_s28 = sshll.u32 %s869_s5, 4  ;;  %s766_s28 = int_to_ptr.vmem [resolvable:$true] %s765_s28 }
  0xc7   :  { %v317_v5 = vadd.f32 %v316_v4, %v200_v0  ;;  %826 = vmatmul.msk.f32.gmra.mxu3 %vm431_vm4, %v421_v3 }
  0xc9   :  { %v390_v7 = vadd.f32 %v358_v6, %v317_v5 }
  0xca   :  { %v203_v8 = vpop.f32.mrf.mxu1 }
  0xcb   :  { %v406_v9 = vmul.f32 0.1, %v390_v7 }
  0xcd   :  { %v422_v11 = vmax.f32 %v390_v7, %v406_v9 }
  0xce   :  { %v319_v12 = vpop.f32.mrf.mxu2 }
  0xcf   :  { %v320_v13 = vadd.f32 %v319_v12, %v203_v8  ;;  %827 = vmatmul.msk.f32.gmra.mxu3 %vm431_vm4, %v422_v11 }
  0xd1   :  { %v391_v15 = vadd.f32 %v359_v14, %v320_v13 }
  0xd2   :  { %v206_v16 = vpop.f32.mrf.mxu1 }
  0xd3   :  { %v407_v17 = vmul.f32 0.1, %v391_v15 }
  0xd5   :  { %v423_v19 = vmax.f32 %v391_v15, %v407_v17 }
  0xd6   :  { %v322_v21 = vpop.f32.mrf.mxu2 }
  0xd7   :  { %v323_v22 = vadd.f32 %v322_v21, %v206_v16  ;;  %828 = vmatmul.msk.f32.gmra.mxu3 %vm431_vm4, %v423_v19 }
  0xd9   :  { %v392_v24 = vadd.f32 %v360_v23, %v323_v22 }
  0xda   :  { %v209_v25 = vpop.f32.mrf.mxu1 }
  0xdb   :  { %v408_v26 = vmul.f32 0.1, %v392_v24 }
  0xdd   :  { %v424_v28 = vmax.f32 %v392_v24, %v408_v26 }
  0xde   :  { %v325_v29 = vpop.f32.mrf.mxu2 }
  0xdf   :  { %v326_v30 = vadd.f32 %v325_v29, %v209_v25  ;;  %829 = vmatmul.msk.f32.gmra.mxu3 %vm431_vm4, %v424_v28 }
  0xe1   :  { %v393_v32 = vadd.f32 %v361_v31, %v326_v30 }
  0xe2   :  { %v212_v35 = vpop.f32.mrf.mxu1 }
  0xe3   :  { %v409_v33 = vmul.f32 0.1, %v393_v32 }
  0xe5   :  { %v425_v36 = vmax.f32 %v393_v32, %v409_v33 }
  0xe6   :  { %v328_v37 = vpop.f32.mrf.mxu2 }
  0xe7   :  { %v329_v38 = vadd.f32 %v328_v37, %v212_v35  ;;  %830 = vmatmul.msk.f32.gmra.mxu3 %vm431_vm4, %v425_v36 }
  0xe9   :  { %v394_v40 = vadd.f32 %v362_v39, %v329_v38 }
  0xeb   :  { %v410_v42 = vmul.f32 0.1, %v394_v40 }
  0xed   :  { %v426_v43 = vmax.f32 %v394_v40, %v410_v42 }
  0xef   :  { %831 = vmatmul.msk.f32.gmra.mxu3 %vm431_vm4, %v426_v43 }
 0x112   :  { %v506_v44 = vpop.f32.mrf.mxu3 }
 0x113   :  { %v507_v48 = vadd.f32 %v1103_v47, %v506_v44 }
 0x115   :  { %v548_v55 = vmul.f32 0.1, %v507_v48 }
 0x117   :  { %v564_v62 = vmax.f32 %v507_v48, %v548_v55 }
 0x119   :  { %v598_v8 = vsel %vm431_vm4, %v564_v62, -inf }
 0x11a   :  { %v509_v45 = vpop.f32.mrf.mxu3  ;;  %v599_v15 = vrot.slane %v598_v8, 4 }
 0x11b   :  { %v510_v50 = vadd.f32 %v1103_v47, %v509_v45 }
 0x11c   :  { %v600_v28 = vmax.f32 %v598_v8, %v599_v15 }
 0x11d   :  { %v549_v57 = vmul.f32 0.1, %v510_v50 }
 0x11e   :  { %v601_v38 = vrot.slane %v600_v28, 2 }
 0x11f   :  { %v565_v2 = vmax.f32 %v510_v50, %v549_v57 }
 0x121   :  { %v605_v11 = vsel %vm431_vm4, %v565_v2, -inf }
 0x122   :  { %v512_v46 = vpop.f32.mrf.mxu3  ;;  %v606_v18 = vrot.slane %v605_v11, 4 }
 0x123   :  { %v513_v52 = vadd.f32 %v1103_v47, %v512_v46 }
 0x124   :  { %v607_v31 = vmax.f32 %v605_v11, %v606_v18 }
 0x125   :  { %v550_v59 = vmul.f32 0.1, %v513_v52 }
 0x126   :  { %v608_v43 = vrot.slane %v607_v31, 2 }
 0x127   :  { %v566_v4 = vmax.f32 %v513_v52, %v550_v59 }
 0x128   :  { %v609_v52 = vmax.f32 %v607_v31, %v608_v43 }
 0x129   :  { %v612_v14 = vsel %vm431_vm4, %v566_v4, -inf }
 0x12a   :  { %v515_v20 = vpop.f32.mrf.mxu3  ;;  %v613_v23 = vrot.slane %v612_v14, 4 }
 0x12b   :  { %v516_v53 = vadd.f32 %v1103_v47, %v515_v20 }
 0x12c   :  { %v614_v34 = vmax.f32 %v612_v14, %v613_v23 }
 0x12d   :  { %v551_v61 = vmul.f32 0.1, %v516_v53 }
 0x12e   :  { %v497_v49 = vpop.f32.mrf.mxu0  ;;  %v615_v45 = vrot.slane %v614_v34, 2 }
 0x12f   :  { %v498_v51 = vadd.f32 %v1103_v47, %v497_v49  ;;  %v567_v6 = vmax.f32 %v516_v53, %v551_v61  ;;  %v602_v49 = vmax.f32 %v600_v28, %v601_v38  ;;  %v610_v61 = vrot.slane %v609_v52, 1 }
 0x130   :  { %v616_v55 = vmax.f32 %v614_v34, %v615_v45 }
 0x131   :  { %v545_v54 = vmul.f32 0.1, %v498_v51  ;;  %v619_v16 = vsel %vm431_vm4, %v567_v6, -inf  ;;  %v603_v59 = vrot.slane %v602_v49, 1  ;;  %v611_v6 = vmax.f32 %v609_v52, %v610_v61 }
 0x132   :  { %v518_v56 = vpop.f32.mrf.mxu3  ;;  %v620_v26 = vrot.slane %v619_v16, 4 }
 0x133   :  { %v519_v58 = vadd.f32 %v1103_v47, %v518_v56  ;;  %v561_v41 = vmax.f32 %v498_v51, %v545_v54 }
 0x134   :  { %v621_v37 = vmax.f32 %v619_v16, %v620_v26 }
 0x135   :  { %v552_v63 = vmul.f32 0.1, %v519_v58  ;;  %v577_v5 = vsel %vm431_vm4, %v561_v41, -inf }
 0x136   :  { %v500_v0 = vpop.f32.mrf.mxu0  ;;  %v578_v12 = vrot.slane %v577_v5, 4  ;;  %v622_v20 = vrot.slane %v621_v37, 2 }
 0x137   :  { %v501_v3 = vadd.f32 %v1103_v47, %v500_v0  ;;  %v568_v9 = vmax.f32 %v519_v58, %v552_v63  ;;  %v617_v63 = vrot.slane %v616_v55, 1 }
 0x138   :  { %v579_v24 = vmax.f32 %v577_v5, %v578_v12  ;;  %v623_v57 = vmax.f32 %v621_v37, %v622_v20 }
 0x139   :  { %v546_v7 = vmul.f32 0.1, %v501_v3  ;;  %v626_v19 = vsel %vm431_vm4, %v568_v9, -inf  ;;  %v618_v9 = vmax.f32 %v616_v55, %v617_v63 }
 0x13a   :  { %v1120_v10 = vpop.f32.mrf.mxu3  ;;  %v627_v29 = vrot.slane %v626_v19, 4  ;;  %v580_v35 = vrot.slane %v579_v24, 2  ;;  %v624_v1 = vrot.slane %v623_v57, 1 }
 0x13b   :  { %v562_v13 = vmax.f32 %v501_v3, %v546_v7  ;;  %v604_v3 = vmax.f32 %v602_v49, %v603_v59 }
 0x13c   :  { %v628_v39 = vmax.f32 %v626_v19, %v627_v29  ;;  %v581_v46 = vmax.f32 %v579_v24, %v580_v35  ;;  %v625_v12 = vmax.f32 %v623_v57, %v624_v1 }
 0x13d   :  { %v584_v17 = vsel %vm431_vm4, %v562_v13, -inf }
 0x13e   :  { %v585_v21 = vrot.slane %v584_v17, 4  ;;  %v503_v22 = vpop.f32.mrf.mxu0  ;;  %v629_v50 = vrot.slane %v628_v39, 2  ;;  %v582_v56 = vrot.slane %v581_v46, 1 }
 0x13f   :  { %v504_v25 = vadd.f32 %v1103_v47, %v503_v22  ;;  %v522_v22 = vadd.f32 %v1103_v47, %v1120_v10 }
 0x140   :  { %v586_v27 = vmax.f32 %v584_v17, %v585_v21  ;;  %v630_v41 = vmax.f32 %v628_v39, %v629_v50  ;;  %v583_v0 = vmax.f32 %v581_v46, %v582_v56 }
 0x141   :  { %v547_v30 = vmul.f32 0.1, %v504_v25 }
 0x142   :  { %v587_v32 = vrot.slane %v586_v27, 2  ;;  %v524_v33 = vpop.f32.mrf.mxu3  ;;  %v631_v4 = vrot.slane %v630_v41, 1 }
 0x143   :  { %v563_v36 = vmax.f32 %v504_v25, %v547_v30  ;;  %v525_v18 = vadd.f32 %v1103_v47, %v524_v33 }
 0x144   :  { %v588_v40 = vmax.f32 %v586_v27, %v587_v32  ;;  %v632_v14 = vmax.f32 %v630_v41, %v631_v4  ;;  %v553_v27 = vmul.f32 0.1, %v522_v22 }
 0x145   :  { %v591_v42 = vsel %vm431_vm4, %v563_v36, -inf  ;;  %v554_v25 = vmul.f32 0.1, %v525_v18 }
 0x146   :  { %v592_v44 = vrot.slane %v591_v42, 4  ;;  %v589_v51 = vrot.slane %v588_v40, 1  ;;  %v569_v34 = vmax.f32 %v522_v22, %v553_v27 }
 0x147   :  { %v570_v30 = vmax.f32 %v525_v18, %v554_v25 }
 0x148   :  { %v593_v48 = vmax.f32 %v591_v42, %v592_v44  ;;  %v590_v60 = vmax.f32 %v588_v40, %v589_v51  ;;  %v633_v39 = vsel %vm431_vm4, %v569_v34, -inf }
 0x149   :  { %v640_v37 = vsel %vm431_vm4, %v570_v30, -inf  ;;  %v634_v20 = vrot.slane %v633_v39, 4 }
 0x14a   :  { %v594_v53 = vrot.slane %v593_v48, 2  ;;  %v527_v54 = vpop.f32.mrf.mxu3  ;;  %v708_v5 = vsel %vm707_vm5, %v590_v60, %v583_v0  ;;  %v641_v43 = vrot.slane %v640_v37, 4 }
 0x14b   :  { %v528_v19 = vadd.f32 %v1103_v47, %v527_v54  ;;  %v635_v56 = vmax.f32 %v633_v39, %v634_v20 }
 0x14c   :  { %v595_v58 = vmax.f32 %v593_v48, %v594_v53  ;;  %v642_v52 = vmax.f32 %v640_v37, %v641_v43 }
 0x14d   :  { %v555_v26 = vmul.f32 0.1, %v528_v19  ;;  %v636_v63 = vrot.slane %v635_v56, 2 }
 0x14e   :  { %v596_v62 = vrot.slane %v595_v58, 1  ;;  %v643_v41 = vrot.slane %v642_v52, 2 }
 0x14f   :  { %v571_v31 = vmax.f32 %v528_v19, %v555_v26 }
 0x150   :  { %v597_v2 = vmax.f32 %v595_v58, %v596_v62 }
 0x151   :  { %v647_v38 = vsel %vm431_vm4, %v571_v31, -inf }
 0x152   :  { %v710_v7 = vsel %vm709_vm6, %v597_v2, %v708_v5  ;;  %v530_v8 = vpop.f32.mrf.mxu3  ;;  %v648_v45 = vrot.slane %v647_v38, 4  ;;  %v644_v5 = vmax.f32 %v642_v52, %v643_v41 }
 0x153   :  { %v712_v11 = vsel %vm711_vm7, %v604_v3, %v710_v7  ;;  %v531_v23 = vadd.f32 %v1103_v47, %v530_v8 }
 0x154   :  { %v714_v13 = vsel %vm713_vm8, %v611_v6, %v712_v11  ;;  %v649_v54 = vmax.f32 %v647_v38, %v648_v45  ;;  %v637_v11 = vmax.f32 %v635_v56, %v636_v63 }
 0x155   :  { %v716_v15 = vsel %vm715_vm9, %v618_v9, %v714_v13  ;;  %v556_v28 = vmul.f32 0.1, %v531_v23 }
 0x156   :  { %v718_v16 = vsel %vm717_vm10, %v625_v12, %v716_v15  ;;  %v650_v61 = vrot.slane %v649_v54, 2  ;;  %v638_v22 = vrot.slane %v637_v11, 1 }
 0x157   :  { %v720_v17 = vsel %vm719_vm11, %v632_v14, %v718_v16  ;;  %v572_v33 = vmax.f32 %v531_v23, %v556_v28  ;;  %v645_v16 = vrot.slane %v644_v5, 1 }
 0x158   :  { %832 = vmatmul.msk.f32.vlgmr.msra.gmra.mxu0 %vm431_vm4, %v720_v17  ;;  %v651_v8 = vmax.f32 %v649_v54, %v650_v61  ;;  %v639_v30 = vmax.f32 %v637_v11, %v638_v22 }
 0x159   :  { %v654_v40 = vsel %vm431_vm4, %v572_v33, -inf  ;;  %v646_v25 = vmax.f32 %v644_v5, %v645_v16 }
 0x15a   :  { %v533_v21 = vpop.f32.mrf.mxu3  ;;  %v655_v48 = vrot.slane %v654_v40, 4  ;;  %v652_v18 = vrot.slane %v651_v8, 1 }
 0x15b   :  { %v534_v24 = vadd.f32 %v1103_v47, %v533_v21  ;;  %v721_v33 = vsel %vm707_vm5, %v646_v25, %v639_v30 }
 0x15c   :  { %v656_v57 = vmax.f32 %v654_v40, %v655_v48  ;;  %v653_v28 = vmax.f32 %v651_v8, %v652_v18 }
 0x15d   :  { %v557_v29 = vmul.f32 0.1, %v534_v24 }
 0x15e   :  { %v657_v0 = vrot.slane %v656_v57, 2 }
 0x15f   :  { %v573_v36 = vmax.f32 %v534_v24, %v557_v29 }
 0x160   :  { %v658_v12 = vmax.f32 %v656_v57, %v657_v0 }
 0x161   :  { %v661_v44 = vsel %vm431_vm4, %v573_v36, -inf }
 0x162   :  { %v536_v32 = vpop.f32.mrf.mxu3  ;;  %v662_v50 = vrot.slane %v661_v44, 4  ;;  %v659_v23 = vrot.slane %v658_v12, 1 }
 0x163   :  { %v537_v35 = vadd.f32 %v1103_v47, %v536_v32 }
 0x164   :  { %v663_v58 = vmax.f32 %v661_v44, %v662_v50  ;;  %v660_v31 = vmax.f32 %v658_v12, %v659_v23 }
 0x165   :  { %v558_v10 = vmul.f32 0.1, %v537_v35 }
 0x166   :  { %v664_v3 = vrot.slane %v663_v58, 2 }
 0x167   :  { %v574_v42 = vmax.f32 %v537_v35, %v558_v10  ;;  %v722_v10 = vsel %vm709_vm6, %v653_v28, %v721_v33 }
 0x168   :  { %v665_v14 = vmax.f32 %v663_v58, %v664_v3  ;;  %v723_v39 = vsel %vm711_vm7, %v660_v31, %v722_v10 }
 0x169   :  { %v668_v46 = vsel %vm431_vm4, %v574_v42, -inf }
 0x16a   :  { %v539_v49 = vpop.f32.mrf.mxu3  ;;  %v669_v53 = vrot.slane %v668_v46, 4 }
 0x16b   :  { %v540_v51 = vadd.f32 %v1103_v47, %v539_v49 }
 0x16c   :  { %v670_v60 = vmax.f32 %v668_v46, %v669_v53 }
 0x16d   :  { %v559_v55 = vmul.f32 0.1, %v540_v51 }
 0x16e   :  { %v671_v6 = vrot.slane %v670_v60, 2 }
 0x16f   :  { %v575_v59 = vmax.f32 %v540_v51, %v559_v55 }
 0x170   :  { %v672_v17 = vmax.f32 %v670_v60, %v671_v6 }
 0x171   :  { %v675_v62 = vsel %vm431_vm4, %v575_v59, -inf }
 0x172   :  { %v676_v1 = vrot.slane %v675_v62, 4  ;;  %v542_v2 = vpop.f32.mrf.mxu3  ;;  %v673_v26 = vrot.slane %v672_v17, 1 }
 0x173   :  { %v543_v4 = vadd.f32 %v1103_v47, %v542_v2  ;;  %v666_v47 = vrot.slane %v665_v14, 1 }
 0x174   :  { %v677_v7 = vmax.f32 %v675_v62, %v676_v1  ;;  %v674_v35 = vmax.f32 %v672_v17, %v673_v26 }
 0x175   :  { %v560_v9 = vmul.f32 0.1, %v543_v4  ;;  %v667_v34 = vmax.f32 %v665_v14, %v666_v47 }
 0x176   :  { %v678_v13 = vrot.slane %v677_v7, 2 }
 0x177   :  { %v576_v15 = vmax.f32 %v543_v4, %v560_v9  ;;  %v724_v40 = vsel %vm713_vm8, %v667_v34, %v723_v39 }
 0x178   :  { %v679_v19 = vmax.f32 %v677_v7, %v678_v13  ;;  %v725_v43 = vsel %vm715_vm9, %v674_v35, %v724_v40 }
 0x179   :  { %v682_v21 = vsel %vm431_vm4, %v576_v15, -inf }
 0x17a   :  { %v683_v24 = vrot.slane %v682_v21, 4  ;;  %v680_v29 = vrot.slane %v679_v19, 1 }
 0x17c   :  { %v684_v27 = vmax.f32 %v682_v21, %v683_v24  ;;  %v681_v37 = vmax.f32 %v679_v19, %v680_v29 }
 0x17e   :  { %v685_v32 = vrot.slane %v684_v27, 2  ;;  %v726_v44 = vsel %vm717_vm10, %v681_v37, %v725_v43 }
 0x180   :  { %v686_v36 = vmax.f32 %v684_v27, %v685_v32 }
 0x182   :  { %v687_v38 = vrot.slane %v686_v36, 1 }
 0x184   :  { %v688_v42 = vmax.f32 %v686_v36, %v687_v38 }
 0x186   :  { %v727_v45 = vsel %vm719_vm11, %v688_v42, %v726_v44 }
 0x187   :  { %833 = vmatmul.msk.f32.gmra.mxu0 %vm431_vm4, %v727_v45 }
 0x1d5   :  { %v749_v46 = vpop.f32.mrf.mxu0 }
 0x1d6   :  { %v755_v20 = vmul.f32 0.1, %v749_v46 }
 0x1d8   :  { %v757_v48 = vmax.f32 %v749_v46, %v755_v20 }
 0x1da   :  { %759 = vst.msk [vmem:[#allocation2] sm:$0xff] %vm431_vm4, %v757_v48 }
 0x204   :  { %v752_v49 = vpop.f32.mrf.mxu0 }
 0x205   :  { %v756_v50 = vmul.f32 0.1, %v752_v49 }
 0x207   :  { %v758_v51 = vmax.f32 %v752_v49, %v756_v50 }
 0x209   :  { %760 = vst.msk [vmem:[#allocation2 + $0x8] sm:$0xff] %vm431_vm4, %v758_v51 }
 0x20a   :  { %773 = dma.vmem_to_hbm [thread:$0]  %s766_s28, 256, %s768_s7, [#allocation3], %s870_s8, %s870_s8, %s871_s9  }
 0x20b   :  { %867 = dma.done.wait [#allocation3], 256  }
 0x20c   :  { %868 = vsyncadd [#allocation3], 4294967040 }
 0x20d   :  { %778 = vsyncpa [#allocation3], 1 }

</bundles_post_ra>
